<compile_context>
chip_gen: v5e
topology: v5e:2x2
jax: 0.10.0
libtpu: 0.0.40
codegen_flags: <defaults>
</compile_context>

<pallas_src>
import jax
import jax.numpy as jnp
from jax.experimental import pallas as pl
from jax.experimental.pallas import tpu as pltpu

NEG_SLOPE = 0.01   # PyTorch LeakyReLU default negative_slope
LANE = 128         # vreg lane width (pad feature dims to this; 256 would fully fill
                   # the v6e/v7x MXU on tiny layers at the cost of extra padding)
SUBLANE = 8


def _leaky_relu(x):
    return jnp.where(x > 0, x, NEG_SLOPE * x)


def _pad_axis(a, axis, multiple):
    size = a.shape[axis]
    pad = (-size) % multiple
    if pad == 0:
        return a
    widths = [(0, 0)] * a.ndim
    widths[axis] = (0, pad)
    return jnp.pad(a, widths)


def _vmem_budget_bytes():
    """Generation-aware usable-VMEM budget (leaves headroom for compiler scratch)."""
    try:
        cap = getattr(pltpu.get_tpu_info(), "vmem_capacity_bytes", 64 << 20)
    except Exception:
        cap = 64 << 20  # conservative fallback (v7x per-TC physical VMEM)
    # v5e/v6e (128 MiB) -> ~96 MiB usable; v7x (64 MiB) -> 48 MiB usable.
    return int(min(100 << 20, (cap * 3) // 4))


def _resident_spec(block_shape, index_map):
    """BlockSpec for a block whose index never changes: single-buffer it."""
    buffered = getattr(pl, "Buffered", None)
    if buffered is not None:
        try:
            return pl.BlockSpec(block_shape, index_map, pipeline_mode=buffered(1))
        except TypeError:
            pass
    return pl.BlockSpec(block_shape, index_map)


# ---------------------------------------------------------------------------
# Kernels
# ---------------------------------------------------------------------------

def fcn_kernel(x_ref, w1_ref, b1_ref, w2_ref, b2_ref, o_ref):
    """Fused: h = leaky_relu(dropout_eval(x @ W1 + b1)); y = leaky_relu(h @ W2 + b2)."""
    x = x_ref[...].astype(w1_ref.dtype)  # cast in-kernel: no extra HBM pass for x
    h = jnp.dot(x, w1_ref[...], preferred_element_type=jnp.float32)
    h = h + b1_ref[...].astype(jnp.float32)
    # Dropout(p=0.5) in eval/inference mode == identity.
    h = _leaky_relu(h)
    y = jnp.dot(h.astype(w2_ref.dtype), w2_ref[...],
                preferred_element_type=jnp.float32)
    y = y + b2_ref[...].astype(jnp.float32)
    y = _leaky_relu(y)
    o_ref[...] = y.astype(o_ref.dtype)


def fcn_kernel_ksplit(x_ref, w1_ref, b1_ref, w2_ref, b2_ref, o_ref, acc_ref):
    """Same fusion, but the first matmul's K dim is tiled on grid axis 1 ("arbitrary")."""
    k = pl.program_id(1)

    @pl.when(k == 0)
    def _():
        acc_ref[...] = jnp.zeros_like(acc_ref)

    acc_ref[...] += jnp.dot(x_ref[...].astype(w1_ref.dtype), w1_ref[...],
                            preferred_element_type=jnp.float32)

    @pl.when(k == pl.num_programs(1) - 1)
    def _():
        h = acc_ref[...] + b1_ref[...].astype(jnp.float32)
        h = _leaky_relu(h)                      # Dropout eval-mode == identity
        y = jnp.dot(h.astype(w2_ref.dtype), w2_ref[...],
                    preferred_element_type=jnp.float32)
        y = y + b2_ref[...].astype(jnp.float32)
        y = _leaky_relu(y)
        o_ref[...] = y.astype(o_ref.dtype)


# ---------------------------------------------------------------------------
# Wrapper
# ---------------------------------------------------------------------------

def fcn_forward(x, w1, b1, w2, b2, *, block_b=512, block_k=None, matmul_dtype=None):
    """x: (B, n_input); w1: (n_input, hidden); b1: (1, hidden);
    w2: (hidden, n_out); b2: (1, n_out). Returns (B, n_out) in x.dtype.

    matmul_dtype: optional dtype (e.g. jnp.bfloat16) for the MXU matmuls (recommended
    for inference on all generations incl. v5e); accumulation and the bias/LeakyReLU
    epilogue stay f32.
    block_k: optional K tile (multiple of 128) forcing the K-split path (otherwise it
    is enabled automatically when W1 is too large to keep resident in VMEM).
    """
    B, n_input = x.shape
    n_out = w2.shape[1]
    out_dtype = x.dtype
    mm_dtype = jnp.dtype(matmul_dtype) if matmul_dtype is not None else jnp.dtype(x.dtype)

    # --- Lane-pad feature dims to multiples of 128 (zero padding is exact for linear
    #     layers: padded K cols/rows contribute 0; padded output cols are sliced away). ---
    xp = _pad_axis(x, 1, LANE)                              # keep original dtype
    w1p = _pad_axis(_pad_axis(w1.astype(mm_dtype), 0, LANE), 1, LANE)
    b1p = _pad_axis(b1.astype(jnp.float32), 1, LANE)
    w2p = _pad_axis(_pad_axis(w2.astype(mm_dtype), 0, LANE), 1, LANE)
    b2p = _pad_axis(b2.astype(jnp.float32), 1, LANE)

    n_in_p, hid_p, out_p = xp.shape[1], w1p.shape[1], w2p.shape[1]

    x_item = jnp.dtype(x.dtype).itemsize
    w_item = jnp.dtype(mm_dtype).itemsize
    o_item = jnp.dtype(out_dtype).itemsize

    vmem_cap = _vmem_budget_bytes()

    # --- Decide whether to K-split the first matmul (large n_input / v7x). ---
    w1_bytes = n_in_p * hid_p * w_item
    use_ksplit = (block_k is not None) or (w1_bytes > min(24 << 20, vmem_cap // 3))
    if use_ksplit:
        tk = block_k if block_k is not None else 512
        tk = max(LANE, (tk // LANE) * LANE)
        # K must be a whole number of tiles: edge-block garbage must not leak into
        # the reduction. Zero-padding is exact for linear layers.
        xp = _pad_axis(xp, 1, tk)
        w1p = _pad_axis(w1p, 0, tk)
        n_in_p = xp.shape[1]
    else:
        tk = n_in_p

    # --- Batch tile: >=2 grid steps (v7x megacore split), ~4 steps for pipelining. ---
    tb = min(block_b, B)
    min_steps = 1
    if B >= 2 * SUBLANE:
        min_steps = 2
    if B >= 4 * SUBLANE:
        min_steps = 4
    if min_steps > 1:
        tb = min(tb, -(-B // min_steps))
    if tb < B:
        tb = max(SUBLANE, (tb // SUBLANE) * SUBLANE)

    def _footprint(tb_):
        k_blk = tk if use_ksplit else n_in_p
        fp = 2 * tb_ * k_blk * x_item                       # x tile (double-buffered)
        fp += tb_ * k_blk * w_item                          # in-kernel cast of x
        fp += (2 if use_ksplit else 1) * k_blk * hid_p * w_item   # W1 tile(s)
        fp += hid_p * out_p * w_item                        # W2 (single-buffered)
        fp += (hid_p + out_p) * 4                           # biases (f32)
        fp += tb_ * hid_p * 4                               # h / acc (f32)
        fp += tb_ * hid_p * w_item                          # h cast for 2nd matmul
        fp += tb_ * out_p * 4                               # y (f32)
        fp += 2 * tb_ * out_p * o_item                      # out tile (double-buffered)
        fp += 4 << 20                                       # compiler-internal headroom
        return fp

    while tb > SUBLANE and _footprint(tb) > vmem_cap:
        tb = max(SUBLANE, ((tb // 2) // SUBLANE) * SUBLANE)

    vmem_limit = int(min(vmem_cap, max(_footprint(tb), 32 << 20)))

    cost = pl.CostEstimate(
        flops=2 * B * (n_in_p * hid_p + hid_p * out_p),
        transcendentals=0,
        bytes_accessed=(B * n_in_p * x_item
                        + n_in_p * hid_p * w_item + hid_p * out_p * w_item
                        + (hid_p + out_p) * 4
                        + B * out_p * o_item),
    )

    if not use_ksplit:
        grid = (pl.cdiv(B, tb),)
        grid_spec = pltpu.PrefetchScalarGridSpec(
            num_scalar_prefetch=0,
            grid=grid,
            in_specs=[
                pl.BlockSpec((tb, n_in_p), lambda i: (i, 0)),
                _resident_spec((n_in_p, hid_p), lambda i: (0, 0)),
                _resident_spec((1, hid_p), lambda i: (0, 0)),
                _resident_spec((hid_p, out_p), lambda i: (0, 0)),
                _resident_spec((1, out_p), lambda i: (0, 0)),
            ],
            out_specs=pl.BlockSpec((tb, out_p), lambda i: (i, 0)),
        )
        kernel = fcn_kernel
        dim_sem = ("parallel",)
    else:
        grid = (pl.cdiv(B, tb), n_in_p // tk)
        grid_spec = pltpu.PrefetchScalarGridSpec(
            num_scalar_prefetch=0,
            grid=grid,
            in_specs=[
                pl.BlockSpec((tb, tk), lambda i, k: (i, k)),
                pl.BlockSpec((tk, hid_p), lambda i, k: (k, 0)),
                _resident_spec((1, hid_p), lambda i, k: (0, 0)),
                _resident_spec((hid_p, out_p), lambda i, k: (0, 0)),
                _resident_spec((1, out_p), lambda i, k: (0, 0)),
            ],
            out_specs=pl.BlockSpec((tb, out_p), lambda i, k: (i, 0)),
            scratch_shapes=[pltpu.VMEM((tb, hid_p), jnp.float32)],
        )
        kernel = fcn_kernel_ksplit
        dim_sem = ("parallel", "arbitrary")

    out_padded = pl.pallas_call(
        kernel,
        out_shape=jax.ShapeDtypeStruct((B, out_p), out_dtype),
        grid_spec=grid_spec,
        compiler_params=pltpu.CompilerParams(
            dimension_semantics=dim_sem,
            vmem_limit_bytes=vmem_limit,
        ),
        cost_estimate=cost,
    )(xp, w1p, b1p, w2p, b2p)

    return out_padded[:, :n_out]


# ---------------------------------------------------------------------------
# Reference / params / self-test
# ---------------------------------------------------------------------------

def init_params(key, n_input, n_out, dtype=jnp.float32):
    """Deterministic init mimicking nn.Linear's uniform(-1/sqrt(fan_in), 1/sqrt(fan_in))."""
    hidden = n_input // 4
    k1, k2, k3, k4 = jax.random.split(key, 4)
    bound1 = 1.0 / (n_input ** 0.5)
    bound2 = 1.0 / (hidden ** 0.5)
    w1 = jax.random.uniform(k1, (n_input, hidden), dtype, -bound1, bound1)
    b1 = jax.random.uniform(k2, (1, hidden), dtype, -bound1, bound1)
    w2 = jax.random.uniform(k3, (hidden, n_out), dtype, -bound2, bound2)
    b2 = jax.random.uniform(k4, (1, n_out), dtype, -bound2, bound2)
    return w1, b1, w2, b2


def fcn_reference(x, w1, b1, w2, b2):
    h = _leaky_relu(x @ w1 + b1)          # dropout eval == identity
    return _leaky_relu(h @ w2 + b2)


if __name__ == "__main__":
    key = jax.random.PRNGKey(0)
    kx, kp, kx2, kp2 = jax.random.split(key, 4)

    # ---- Case 1: small FCN, fully-resident fused path (f32 and bf16 matmuls). ----
    B, n_input, n_out = 16, 32, 8          # hidden = n_input // 4 = 8
    x = jax.random.normal(kx, (B, n_input), dtype=jnp.float32)
    w1, b1, w2, b2 = init_params(kp, n_input, n_out)
    ref = fcn_reference(x, w1, b1, w2, b2)

    out_f32 = jax.block_until_ready(fcn_forward(x, w1, b1, w2, b2))
    assert out_f32.shape == (B, n_out), out_f32.shape
    assert jnp.allclose(out_f32, ref, atol=1e-5, rtol=1e-5), "f32 mismatch vs JAX reference"

    out_bf16 = jax.block_until_ready(
        fcn_forward(x, w1, b1, w2, b2, matmul_dtype=jnp.bfloat16))
    assert out_bf16.shape == (B, n_out), out_bf16.shape
    assert jnp.allclose(out_bf16, ref, atol=5e-2, rtol=5e-2), "bf16 mismatch vs JAX reference"

    # ---- Case 2: force the K-split (reduction-tiled) path to exercise it. ----
    B2, n_input2, n_out2 = 32, 256, 8      # hidden = 64; block_k=128 -> 2 K steps
    x2 = jax.random.normal(kx2, (B2, n_input2), dtype=jnp.float32)
    p2 = init_params(kp2, n_input2, n_out2)
    ref2 = fcn_reference(x2, *p2)
    out_k = jax.block_until_ready(fcn_forward(x2, *p2, block_k=128))
    assert out_k.shape == (B2, n_out2), out_k.shape
    assert jnp.allclose(out_k, ref2, atol=1e-4, rtol=1e-4), "K-split mismatch vs JAX reference"

    print("KERNEL_OK")
</pallas_src>

<mosaic_0001>
module attributes {stable_mosaic.version = 11 : i64} {
  func.func @fcn_kernel(%arg0: i32, %arg1: memref<8x128xf32, #tpu.memory_space<vmem>>, %arg2: memref<128x128xf32, #tpu.memory_space<vmem>>, %arg3: memref<1x128xf32, #tpu.memory_space<vmem>>, %arg4: memref<128x128xf32, #tpu.memory_space<vmem>>, %arg5: memref<1x128xf32, #tpu.memory_space<vmem>>, %arg6: memref<8x128xf32, #tpu.memory_space<vmem>>) attributes {dimension_semantics = [#tpu.dimension_semantics<parallel>], iteration_bounds = array<i64: 2>, scalar_prefetch = 0 : i64, scratch_operands = 0 : i64, tpu.core_type = #tpu.core_type<tc>, window_params = [{transform_indices = @transform_0, window_bounds = array<i64: 8, 128>}, {pipeline_mode = #tpu.pipeline_mode<synchronous>, transform_indices = @transform_1, window_bounds = array<i64: 128, 128>}, {pipeline_mode = #tpu.pipeline_mode<synchronous>, transform_indices = @transform_2, window_bounds = array<i64: 1, 128>}, {pipeline_mode = #tpu.pipeline_mode<synchronous>, transform_indices = @transform_3, window_bounds = array<i64: 128, 128>}, {pipeline_mode = #tpu.pipeline_mode<synchronous>, transform_indices = @transform_4, window_bounds = array<i64: 1, 128>}, {transform_indices = @transform_5, window_bounds = array<i64: 8, 128>}]} {
    %c0 = arith.constant 0 : index
    %c0_0 = arith.constant 0 : index
    %0 = vector.load %arg1[%c0, %c0_0] : memref<8x128xf32, #tpu.memory_space<vmem>>, vector<8x128xf32>
    %c0_1 = arith.constant 0 : index
    %c0_2 = arith.constant 0 : index
    %1 = vector.load %arg2[%c0_1, %c0_2] : memref<128x128xf32, #tpu.memory_space<vmem>>, vector<128x128xf32>
    %cst = arith.constant dense<0.000000e+00> : vector<8x128xf32>
    %2 = tpu.matmul %0, %1, %cst {dimension_numbers = #tpu.dot_dimension_numbers<[1], [0], [0], [1], [0, 0, 1, 1], [], []>} : vector<8x128xf32>, vector<128x128xf32>, vector<8x128xf32> -> vector<8x128xf32>
    %c0_3 = arith.constant 0 : index
    %c0_4 = arith.constant 0 : index
    %3 = vector.load %arg3[%c0_3, %c0_4] : memref<1x128xf32, #tpu.memory_space<vmem>>, vector<1x128xf32>
    %4 = vector.broadcast %3 : vector<1x128xf32> to vector<8x128xf32>
    %5 = arith.addf %2, %4 : vector<8x128xf32>
    %cst_5 = arith.constant 0.000000e+00 : f32
    %6 = vector.broadcast %cst_5 : f32 to vector<8x128xf32>
    %7 = arith.cmpf ogt, %5, %6 : vector<8x128xf32>
    %cst_6 = arith.constant 0.00999999977 : f32
    %8 = vector.broadcast %cst_6 : f32 to vector<8x128xf32>
    %9 = arith.mulf %8, %5 : vector<8x128xf32>
    %10 = arith.select %7, %5, %9 : vector<8x128xi1>, vector<8x128xf32>
    %c0_7 = arith.constant 0 : index
    %c0_8 = arith.constant 0 : index
    %11 = vector.load %arg4[%c0_7, %c0_8] : memref<128x128xf32, #tpu.memory_space<vmem>>, vector<128x128xf32>
    %cst_9 = arith.constant dense<0.000000e+00> : vector<8x128xf32>
    %12 = tpu.matmul %10, %11, %cst_9 {dimension_numbers = #tpu.dot_dimension_numbers<[1], [0], [0], [1], [0, 0, 1, 1], [], []>} : vector<8x128xf32>, vector<128x128xf32>, vector<8x128xf32> -> vector<8x128xf32>
    %c0_10 = arith.constant 0 : index
    %c0_11 = arith.constant 0 : index
    %13 = vector.load %arg5[%c0_10, %c0_11] : memref<1x128xf32, #tpu.memory_space<vmem>>, vector<1x128xf32>
    %14 = vector.broadcast %13 : vector<1x128xf32> to vector<8x128xf32>
    %15 = arith.addf %12, %14 : vector<8x128xf32>
    %cst_12 = arith.constant 0.000000e+00 : f32
    %16 = vector.broadcast %cst_12 : f32 to vector<8x128xf32>
    %17 = arith.cmpf ogt, %15, %16 : vector<8x128xf32>
    %cst_13 = arith.constant 0.00999999977 : f32
    %18 = vector.broadcast %cst_13 : f32 to vector<8x128xf32>
    %19 = arith.mulf %18, %15 : vector<8x128xf32>
    %20 = arith.select %17, %15, %19 : vector<8x128xi1>, vector<8x128xf32>
    %c0_14 = arith.constant 0 : index
    %c0_15 = arith.constant 0 : index
    %21 = vector.load %arg6[%c0_14, %c0_15] : memref<8x128xf32, #tpu.memory_space<vmem>>, vector<8x128xf32>
    tpu.vector_store %arg6[%c0_14, %c0_15], %20 {strides = array<i32>} : memref<8x128xf32, #tpu.memory_space<vmem>>, vector<8x128xf32>,
    return
  }
  func.func @transform_0(%arg0: i32) -> (i32, i32) {
    %c0_i32 = arith.constant 0 : i32
    %c0_i32_0 = arith.constant 0 : i32
    return %arg0, %c0_i32 : i32, i32
  }
  func.func @transform_1(%arg0: i32) -> (i32, i32) {
    %c0_i32 = arith.constant 0 : i32
    %c0_i32_0 = arith.constant 0 : i32
    %c0_i32_1 = arith.constant 0 : i32
    return %c0_i32, %c0_i32_0 : i32, i32
  }
  func.func @transform_2(%arg0: i32) -> (i32, i32) {
    %c0_i32 = arith.constant 0 : i32
    %c0_i32_0 = arith.constant 0 : i32
    %c0_i32_1 = arith.constant 0 : i32
    return %c0_i32, %c0_i32_0 : i32, i32
  }
  func.func @transform_3(%arg0: i32) -> (i32, i32) {
    %c0_i32 = arith.constant 0 : i32
    %c0_i32_0 = arith.constant 0 : i32
    %c0_i32_1 = arith.constant 0 : i32
    return %c0_i32, %c0_i32_0 : i32, i32
  }
  func.func @transform_4(%arg0: i32) -> (i32, i32) {
    %c0_i32 = arith.constant 0 : i32
    %c0_i32_0 = arith.constant 0 : i32
    %c0_i32_1 = arith.constant 0 : i32
    return %c0_i32, %c0_i32_0 : i32, i32
  }
  func.func @transform_5(%arg0: i32) -> (i32, i32) {
    %c0_i32 = arith.constant 0 : i32
    %c0_i32_0 = arith.constant 0 : i32
    return %arg0, %c0_i32 : i32, i32
  }
}

</mosaic_0001>

<bundles_post_ra>
// kernel: tpu_custom_call.1
= control target key start
LH: loop header
LB: loop body
LE: loop exit
PB: predicated region body
PF: predicated region fallthrough
CT: control target
= control target key end

     0   :  { %10 = vsyncpa [#allocation3], 0  ;;  %s909_s0 = inlined_call_operand.hbm [shape: f32[16,128], index: 0, kind: input, shape index: {}]   ;;  %s910_s1 = inlined_call_operand.hbm [shape: f32[128,128], index: 1, kind: input, shape index: {}]   ;;  %s911_s2 = inlined_call_operand.vmem [shape: f32[1,128], index: 2, kind: input, shape index: {}]   ;;  %s912_s3 = inlined_call_operand.hbm [shape: f32[128,128], index: 3, kind: input, shape index: {}]   ;;  %s913_s4 = inlined_call_operand.vmem [shape: f32[1,128], index: 4, kind: input, shape index: {}]   ;;  %s914_s5 = inlined_call_operand.hbm [shape: f32[16,128], index: 5, kind: output, shape index: {}]  }
   0x1   :  { %12 = vsyncpa [#allocation3 + $0x1], 0 }
   0x2   :  { %13 = vsyncpa [#allocation6], 0 }
   0x3   :  { %14 = vsyncpa [#allocation4], 0 }
   0x4   :  { %16 = vsyncpa [#allocation4 + $0x1], 0  ;;  %s751_s18 = smov 0   ;;  %s753_s19 = smov 0  }
   0x5   :  { %s755_s20 = smov 0   ;;  %s757_s21 = smov 0  }
   0x6 LB: > { %s174_s24 = sshll.u32 %s910_s1, 4  ;;  %s775_s25 = sadd.s32 4294967295, %s715_s21   ;;  %s715_s21 = sphi %s757_s21, %s925_s21   ;;  %s711_s20 = sphi %s755_s20, %s924_s20   ;;  %s707_s19 = sphi %s753_s19, %s923_s19   ;;  %s703_s18 = sphi %s751_s18, %s922_s18   ;;  %s175_s24 = int_to_ptr.hbm [resolvable:$true] %s174_s24 }
   0x7   : > { %p469_p0 = scmp.ge.s32.totalorder %s715_s21, 1  ;;  %p43_p1 = scmp.eq.s32.totalorder %s775_s25, 0 }
   0x8   : > { %p163_p2 = scmp.lt.s32.totalorder %s715_s21, 3  ;;  %s717_s27 = smov [#allocation5]  }
   0x9   : > { %s176_s28 = sshll.u32 %s717_s27, 4  ;;  %s191_s6 = sshll.u32 %s912_s3, 4  ;;  %s177_s28 = int_to_ptr.vmem [resolvable:$true] %s176_s28  ;;  %s192_s6 = int_to_ptr.hbm [resolvable:$true] %s191_s6 }
   0xa   : > { %p780_p3 = pnand %p469_p0, %p163_p2  ;;  %s718_s7 = smov [#allocation7]  }
   0xb   : > { %s193_s8 = sshll.u32 %s718_s7, 4  ;;  %s719_s9 = smov 128   ;;  %s194_s8 = int_to_ptr.vmem [resolvable:$true] %s193_s8 }
   0xc   : > { %p496_p4 = pneg %p780_p3  ;;  %s720_s10 = smov 8  }
   0xd   : > { %s468_s11 = sadd.s32 4294967294, %s715_s21   ;;  %s794_s12 = sadd.s32 1, %s715_s21  }
   0xe   : > { %p497_p6 = pnand %p496_p4, %p43_p1  ;;  %s26_s13 = ssub.s32 %s715_s21, %s794_s12 }
   0xf   : > { %s29_s14 = sadd.s32 1, %s711_s20  ;;  %p27_p7 = scmp.eq.s32.totalorder %s26_s13, 0 }
  0x10   : > { %499 = dma.hbm_to_vmem [thread:$0]  (!%p497_p6), %s175_s24, 2048, %s177_s28, [#allocation6], %s719_s9, %s719_s9, %s720_s10  }
  0x11   : > { %502 = dma.hbm_to_vmem [thread:$0]  (!%p497_p6), %s192_s6, 2048, %s194_s8, [#allocation6], %s719_s9, %s719_s9, %s720_s10  }
  0x12   : > { %p36_p8 = scmp.ne.s32.totalorder %s711_s20, %s707_s19  ;;  %p37_p9 = scmp.eq.s32.totalorder %s715_s21, 0 }
  0x13   : > { %p42_p10 = scmp.ne.s32.totalorder %s707_s19, %s703_s18  ;;  %p150_p13 = scmp.eq.s32.totalorder %s775_s25, 1 }
  0x14   : > { %s805_s15 = scalar_select %p27_p7, %s711_s20, %s29_s14  }
  0x15   : > { %p807_p11 = por %p37_p9, %p36_p8  ;;  %p813_p12 = por %p43_p1, %p42_p10 }
  0x16   : > { %p156_p0 = scmp.eq.s32.totalorder %s468_s11, 1  ;;  %p513_p2 = scmp.lt.s32.totalorder %s715_s21, 2 }
  0x17   : > { %s210_s22 = sand.u32 1, %s711_s20   ;;  %p820_p4 = por %p150_p13, %p36_p8 }
  0x18   : > { %p824_p6 = por %p156_p0, %p42_p10  ;;  %s473_s27 = sshll.u32 %s210_s22, 3 }
  0x19   : > { %s474_s28 = sshll.u32 %s715_s21, 3  ;;  %s214_s7 = scalar_lea.vmem [#allocation2], %s473_s27 }
  0x1a   : > { %s218_s6 = scalar_lea.hbm %s909_s0, %s474_s28  ;;  %s222_s8 = sshll.u32 %s214_s7, 4  ;;  %s223_s8 = int_to_ptr.vmem [resolvable:$true] %s222_s8 }
  0x1b   : > { %s220_s9 = sshll.u32 %s218_s6, 4  ;;  %p834_p7 = pnand %p513_p2, %p807_p11  ;;  %s221_s9 = int_to_ptr.hbm [resolvable:$true] %s220_s9 }
  0x1c   : > { %s211_s11 = scalar_lea.sflag [#allocation3], %s210_s22  ;;  %s615_s13 = sshra.s32 %s221_s9, 4  ;;  %s616_s13 = int_to_ptr.hbm [resolvable:$true] %s615_s13 }
  0x1d   : > { %s617_s14 = scalar_lea.hbm %s616_s13, 8  ;;  %p619_p9 = pneg %p834_p7 }
  0x1e   : > { %p618_p8 = scmp.ne.s32.totalorder %s616_s13, %s617_s14  ;;  %s622_s29 = scalar_lea.hbm %s909_s0, 16 }
  0x1f   : > { %p623_p11 = scmp.lt.s32.totalorder %s616_s13, %s909_s0  ;;  %p624_p0 = scmp.lt.s32.totalorder %s622_s29, %s617_s14 }
  0x20   : > { %p620_p10 = pnand %p619_p9, %p618_p8 }
  0x21   : > { %p625_p2 = por %p624_p0, %p623_p11 }
  0x22   : > { %p621_p13 = pneg %p620_p10 }
  0x24   : > { %p626_p5 = pnand %p625_p2, %p621_p13 }
  0x26   : > { %629 = shalt.err (!%p626_p5)
}
  0x27   : > { %506 = dma.hbm_to_vmem [thread:$0]  (!%p834_p7), %s221_s9, 128, %s223_s8, %s211_s11  }
  0x28   : > { %231 = sbr.rel (%p780_p3) target bundleno = 345 (0x159), region = 40  ;;  %s851_s22 = sand.u32 (!%p780_p3), 1, %s707_s19  }
  0x29   : > { %s476_s6 = sshll.u32 (!%p780_p3), %s851_s22, 3  ;;  %s234_s7 = scalar_lea.sflag (!%p780_p3), [#allocation3], %s851_s22 }
  0x2a   : > { %s857_s13 = scalar_lea.vmem (!%p780_p3), [#allocation2], %s476_s6 }
  0x2d   : > { %690 = dma.done.wait (%p813_p12), %s234_s7, 128  }
  0x2e   : > { %692 = vsyncadd (%p813_p12), %s234_s7, 4294967168 }
  0x2f   : > { %694 = dma.done.wait (%p43_p1), [#allocation6], 4096  }
  0x30   : > { %696 = vsyncadd (%p43_p1), [#allocation6], 4294963200  ;;  %v291_v0 = vld [vmem:[#allocation5 + $0x78] sm:$0xff]  ;;  %v290_v1 = vld [vmem:[#allocation5 + $0x70] sm:$0xff]  ;;  %s481_s8 = sshll.u32 %s775_s25, 3  ;;  %s274_s28 = scalar_lea.vmem [#allocation8], %s476_s6 }
  0x31   : > { %296 = vmatpush.msra.mxu0 %v291_v0  ;;  %v289_v2 = vld [vmem:[#allocation5 + $0x68] sm:$0xff]  ;;  %v288_v3 = vld [vmem:[#allocation5 + $0x60] sm:$0xff]  ;;  %v334_v4 = vld [vmem:[#allocation7 + $0x78] sm:$0xff]  ;;  %s374_s27 = scalar_lea.hbm %s914_s5, %s481_s8  ;;  %s376_s29 = sshll.u32 %s274_s28, 4  ;;  %s377_s29 = int_to_ptr.vmem [resolvable:$true] %s376_s29 }
  0x32   : > { %v287_v5 = vld [vmem:[#allocation5 + $0x58] sm:$0xff]  ;;  %339 = vmatpush.msra.mxu1 %v334_v4  ;;  %v333_v6 = vld [vmem:[#allocation7 + $0x70] sm:$0xff]  ;;  %v332_v7 = vld [vmem:[#allocation7 + $0x68] sm:$0xff]  ;;  %s378_s30 = sshll.u32 %s374_s27, 4  ;;  %s364_s25 = scalar_lea.sflag [#allocation4], %s851_s22  ;;  %s379_s30 = int_to_ptr.hbm [resolvable:$true] %s378_s30 }
  0x33   : > { %297 = vmatpush.msra.mxu0 %v290_v1  ;;  %v286_v8 = vld [vmem:[#allocation5 + $0x50] sm:$0xff]  ;;  %v331_v9 = vld [vmem:[#allocation7 + $0x60] sm:$0xff]  ;;  %v285_v10 = vld [vmem:[#allocation5 + $0x48] sm:$0xff]  ;;  %s659_s16 = sshra.s32 %s379_s30, 4  ;;  %s665_s6 = scalar_lea.hbm %s914_s5, 16  ;;  %s660_s16 = int_to_ptr.hbm [resolvable:$true] %s659_s16 }
  0x34   : > { %340 = vmatpush.msra.mxu1 %v333_v6  ;;  %v330_v11 = vld [vmem:[#allocation7 + $0x58] sm:$0xff]  ;;  %v284_v12 = vld [vmem:[#allocation5 + $0x40] sm:$0xff]  ;;  %v329_v13 = vld [vmem:[#allocation7 + $0x50] sm:$0xff]  ;;  %s661_s7 = scalar_lea.hbm %s660_s16, 8  ;;  %p666_p12 = scmp.lt.s32.totalorder %s660_s16, %s914_s5 }
  0x35   : > { %298 = vmatpush.msra.mxu0 %v289_v2  ;;  %v283_v14 = vld [vmem:[#allocation5 + $0x38] sm:$0xff]  ;;  %v328_v15 = vld [vmem:[#allocation7 + $0x48] sm:$0xff]  ;;  %v282_v16 = vld [vmem:[#allocation5 + $0x30] sm:$0xff]  ;;  %p662_p1 = scmp.ne.s32.totalorder %s660_s16, %s661_s7  ;;  %p667_p7 = scmp.lt.s32.totalorder %s665_s6, %s661_s7 }
  0x36   : > { %341 = vmatpush.msra.mxu1 %v332_v7  ;;  %v327_v17 = vld [vmem:[#allocation7 + $0x40] sm:$0xff]  ;;  %v281_v18 = vld [vmem:[#allocation5 + $0x28] sm:$0xff]  ;;  %v326_v19 = vld [vmem:[#allocation7 + $0x38] sm:$0xff] }
  0x37   : > { %299 = vmatpush.msra.mxu0 %v288_v3  ;;  %v280_v20 = vld [vmem:[#allocation5 + $0x20] sm:$0xff]  ;;  %v325_v21 = vld [vmem:[#allocation7 + $0x30] sm:$0xff]  ;;  %v279_v22 = vld [vmem:[#allocation5 + $0x18] sm:$0xff]  ;;  %p663_p3 = pnand %p662_p1, %p820_p4  ;;  %p668_p8 = por %p667_p7, %p666_p12 }
  0x38   : > { %342 = vmatpush.msra.mxu1 %v331_v9  ;;  %v324_v23 = vld [vmem:[#allocation7 + $0x28] sm:$0xff]  ;;  %v278_v24 = vld [vmem:[#allocation5 + $0x10] sm:$0xff]  ;;  %v323_v25 = vld [vmem:[#allocation7 + $0x20] sm:$0xff] }
  0x39   : > { %300 = vmatpush.msra.mxu0 %v287_v5  ;;  %v277_v26 = vld [vmem:[#allocation5 + $0x8] sm:$0xff]  ;;  %v322_v27 = vld [vmem:[#allocation7 + $0x18] sm:$0xff]  ;;  %v276_v28 = vld [vmem:[#allocation5] sm:$0xff]  ;;  %p664_p5 = pneg %p663_p3 }
  0x3a   : > { %343 = vmatpush.msra.mxu1 %v330_v11  ;;  %v275_v29 = vld [vmem:[%s857_s13] sm:$0xff]  ;;  %v320_v31 = vld [vmem:[#allocation7 + $0x8] sm:$0xff]  ;;  %v319_v32 = vld [vmem:[#allocation7] sm:$0xff] }
  0x3b   : > { %301 = vmatpush.msra.mxu0 %v286_v8  ;;  %v321_v30 = vld [vmem:[#allocation7 + $0x10] sm:$0xff]  ;;  %p669_p9 = pnand %p668_p8, %p664_p5 }
  0x3c   : > { %344 = vmatpush.msra.mxu1 %v329_v13  ;;  %v553_v33 = vld [vmem:[%s911_s2] ss:$0 sm:$0xff] }
  0x3d   : > { %302 = vmatpush.msra.mxu0 %v285_v10  ;;  %v554_v38 = vld [vmem:[%s913_s4] ss:$0 sm:$0xff] }
  0x3e   : > { %345 = vmatpush.msra.mxu1 %v328_v15 }
  0x3f   : > { %303 = vmatpush.msra.mxu0 %v284_v12 }
  0x40   : > { %346 = vmatpush.msra.mxu1 %v327_v17 }
  0x41   : > { %304 = vmatpush.msra.mxu0 %v283_v14 }
  0x42   : > { %347 = vmatpush.msra.mxu1 %v326_v19 }
  0x43   : > { %305 = vmatpush.msra.mxu0 %v282_v16 }
  0x44   : > { %348 = vmatpush.msra.mxu1 %v325_v21 }
  0x45   : > { %306 = vmatpush.msra.mxu0 %v281_v18 }
  0x46   : > { %349 = vmatpush.msra.mxu1 %v324_v23 }
  0x47   : > { %307 = vmatpush.msra.mxu0 %v280_v20 }
  0x48   : > { %350 = vmatpush.msra.mxu1 %v323_v25 }
  0x49   : > { %308 = vmatpush.msra.mxu0 %v279_v22 }
  0x4a   : > { %351 = vmatpush.msra.mxu1 %v322_v27 }
  0x4b   : > { %309 = vmatpush.msra.mxu0 %v278_v24 }
  0x4c   : > { %352 = vmatpush.msra.mxu1 %v321_v30 }
  0x4d   : > { %310 = vmatpush.msra.mxu0 %v277_v26 }
  0x4e   : > { %353 = vmatpush.msra.mxu1 %v320_v31 }
  0x4f   : > { %311 = vmatpush.msra.mxu0 %v276_v28 }
  0x50   : > { %312 = vmatmul.f32.vlgmr.msra.gmra.mxu0 %v275_v29  ;;  %354 = vmatpush.msra.mxu1 %v319_v32 }
  0xcd   : > { %v313_v34 = vpop.f32.mrf.mxu0 }
  0xce   : > { %v314_v35 = vadd.f32 %v553_v33, %v313_v34 }
  0xd0   : > { %vm316_vm0 = vcmp.gt.f32.partialorder %v314_v35, 0.0  ;;  %v317_v36 = vmul.f32 0.01, %v314_v35 }
  0xd2   : > { %v318_v37 = vsel %vm316_vm0, %v314_v35, %v317_v36 }
  0xd3   : > { %355 = vmatmul.f32.vlgmr.msra.gmra.mxu1 %v318_v37 }
 0x150   : > { %v356_v39 = vpop.f32.mrf.mxu1 }
 0x151   : > { %v357_v40 = vadd.f32 %v554_v38, %v356_v39 }
 0x153   : > { %vm359_vm1 = vcmp.gt.f32.partialorder %v357_v40, 0.0  ;;  %v360_v41 = vmul.f32 0.01, %v357_v40 }
 0x155   : > { %v361_v42 = vsel %vm359_vm1, %v357_v40, %v360_v41 }
 0x156   : > { %362 = vst [vmem:[%s274_s28] sm:$0xff] %v361_v42 }
 0x157   : > { %672 = shalt.err (!%p669_p9)
}
 0x158   : > { %494 = dma.vmem_to_hbm [thread:$0]  (%p820_p4), %s377_s29, 128, %s379_s30, %s364_s25  }
 0x159 PF: > { %s390_s22 = sand.u32 1, %s703_s18   ;;  %p921_p10 = scmp.ge.s32.totalorder %s715_s21, 2 }
 0x15a   : > { %s391_s9 = scalar_lea.sflag [#allocation4], %s390_s22 }
 0x15b   : > { %p508_p13 = pnand %p921_p10, %p824_p6 }
 0x15d   : > { %p509_p11 = pneg %p508_p13 }
 0x15f   : > { %698 = dma.done.wait (%p509_p11), %s391_s9, 128  }
 0x160   : > { %700 = vsyncadd (%p509_p11), %s391_s9, 4294967168  ;;  %p19_p0 = scmp.ge.s32.totalorder %s794_s12, 4   ;;  %s922_s18 = smov %s707_s19 }
 0x161   : > { %s923_s19 = smov %s711_s20  ;;  %s924_s20 = smov %s805_s15 }
 0x162   : > { %s925_s21 = smov %s794_s12  ;;  %21 = sbr.rel (!%p19_p0) target bundleno = 6 (0x6), region = 93 }
 0x167   :  { %397 = vsyncpa [#allocation3], 1 }
 0x168   :  { %399 = vsyncpa [#allocation3 + $0x1], 1 }
 0x169   :  { %400 = vsyncpa [#allocation6], 1 }
 0x16a   :  { %401 = vsyncpa [#allocation4], 1 }
 0x16b   :  { %403 = vsyncpa [#allocation4 + $0x1], 1 }

</bundles_post_ra>
